<compile_context>
chip_gen: v7x
topology: tpu7x:2x2x1
jax: 0.10.0
libtpu: 0.0.40
codegen_flags: <defaults>
</compile_context>

<pallas_src>
import math

import jax
import jax.numpy as jnp
from jax.experimental import pallas as pl
from jax.experimental.pallas import tpu as pltpu


_LANES = 512                      # lane-dense slab width (multiple of 128)
_DEFAULT_BLOCK_ROWS = 2048        # 2048 x 512 x f32 = 4 MiB per block
_VMEM_HEADROOM = 8 << 20          # compiler-internal scratch headroom
_VMEM_CAP = 48 << 20              # stay well under v7x's 64 MiB physical VMEM


def _neg_max_kernel(a_ref, b_ref, o_ref):
    # out = maximum(b, -a): 2 VPU ops per vreg; kernel is HBM-bandwidth bound.
    o_ref[...] = jnp.maximum(b_ref[...], -a_ref[...])


def _pallas_neg_max_2d(a2, b2, rows, lanes, block_rows, itemsize):
    """Streams a lane-dense (rows, lanes) slab through the elementwise kernel."""
    # Dtype-aware sublane alignment: f32 -> 8, bf16 -> 16, int8/fp8 -> 32.
    sub = max(8, 32 // itemsize)
    if rows >= sub:
        br = min(block_rows, (rows // sub) * sub)
        br = max(sub, (br // sub) * sub)
    else:
        br = rows  # full-extent block (allowed when block == array extent)

    grid = (pl.cdiv(rows, br),)
    blk = (br, lanes)
    index_map = lambda i: (i, 0)

    # Explicit VMEM budget: 3 streams x double-buffer x block + headroom.
    block_bytes = br * lanes * itemsize
    vmem_limit = min(_VMEM_CAP, 3 * 2 * block_bytes + _VMEM_HEADROOM)

    n_elems = rows * lanes
    return pl.pallas_call(
        _neg_max_kernel,
        out_shape=jax.ShapeDtypeStruct((rows, lanes), a2.dtype),
        grid_spec=pl.GridSpec(
            grid=grid,
            in_specs=[
                pl.BlockSpec(blk, index_map),
                pl.BlockSpec(blk, index_map),
            ],
            out_specs=pl.BlockSpec(blk, index_map),
        ),
        compiler_params=pltpu.CompilerParams(
            # Parallel row axis -> shards across both v7x TensorCores;
            # free on single-core v5e/v6e.
            dimension_semantics=("parallel",),
            vmem_limit_bytes=vmem_limit,
        ),
        cost_estimate=pl.CostEstimate(
            flops=2 * n_elems,
            transcendentals=0,
            bytes_accessed=3 * n_elems * itemsize,
        ),
    )(a2, b2)


def neg_maximum(arg0, arg1, *, block_rows=_DEFAULT_BLOCK_ROWS,
                lanes=_LANES, force_pallas=False):
    """Computes maximum(arg1, -arg0) elementwise.

    Large inputs stream through a lane-dense Pallas TPU kernel; inputs that
    would compile to a single-block pallas_call (no pipeline overlap) fall
    back to XLA's fused elementwise, which is already at HBM roofline.
    """
    assert arg0.shape == arg1.shape, "elementwise op requires equal shapes"
    assert arg0.dtype == arg1.dtype

    orig_shape = arg0.shape
    n = math.prod(orig_shape) if orig_shape else 1
    itemsize = jnp.dtype(arg0.dtype).itemsize

    # Bypass whenever the problem is smaller than ~3 blocks: a 1-2 step grid
    # only adds launch + pipeline-warmup overhead over fused XLA.
    block_bytes = block_rows * lanes * itemsize
    if not force_pallas and n * itemsize < 3 * block_bytes:
        return jnp.maximum(arg1, -arg0)

    a = arg0.reshape(-1)
    b = arg1.reshape(-1)

    # Lane-dense 2D layout: (rows, chosen_lanes), chosen_lanes a multiple of
    # 128 so stores are full-width. Prefer the widest divisor.
    chosen_lanes = None
    for cand in (lanes, 512, 256, 128):
        if cand % 128 == 0 and n % cand == 0:
            chosen_lanes = cand
            break

    if chosen_lanes is not None:
        rows = n // chosen_lanes
        out2 = _pallas_neg_max_2d(
            a.reshape(rows, chosen_lanes), b.reshape(rows, chosen_lanes),
            rows, chosen_lanes, block_rows, itemsize)
        return out2.reshape(orig_shape)

    # Non-128-divisible element count (rare): Pallas on the 128-divisible
    # prefix, fused XLA on the <128-element tail. Avoids the old pad-both-
    # inputs + slice-output round trips.
    main = (n // 128) * 128
    if main == 0:
        return jnp.maximum(arg1, -arg0)
    m_lanes = 128
    for cand in (lanes, 512, 256, 128):
        if cand % 128 == 0 and main % cand == 0:
            m_lanes = cand
            break
    rows = main // m_lanes
    out_main = _pallas_neg_max_2d(
        a[:main].reshape(rows, m_lanes), b[:main].reshape(rows, m_lanes),
        rows, m_lanes, block_rows, itemsize).reshape(-1)
    out_tail = jnp.maximum(b[main:], -a[main:])
    return jnp.concatenate([out_main, out_tail]).reshape(orig_shape)


def repro_forward(arg0_1, arg1_1):
    # neg = -arg0_1; maximum = max(arg1_1, neg); clone is a no-op in JAX.
    return (neg_maximum(arg0_1, arg1_1),)


if __name__ == "__main__":
    key = jax.random.PRNGKey(0)
    k0, k1, k2, k3, k4, k5, k6, k7 = jax.random.split(key, 8)

    # Small NCHW shape consistent with the module (no intrinsic shape reqs).
    x_shape = (2, 4, 16, 16)
    arg0 = jax.random.normal(k0, x_shape, dtype=jnp.float32)
    arg1 = jax.random.normal(k1, x_shape, dtype=jnp.float32)
    ref = jnp.maximum(arg1, -arg0)

    # Full forward (tiny input -> fused-XLA bypass by design).
    (out,) = repro_forward(arg0, arg1)
    out = jax.block_until_ready(out)
    assert out.shape == ref.shape and out.dtype == ref.dtype
    assert bool(jnp.allclose(out, ref)), "mismatch vs reference (bypass path)"

    # Force the Pallas kernel path on the repro shape (single lane-dense block).
    out_p = jax.block_until_ready(neg_maximum(arg0, arg1, force_pallas=True))
    assert bool(jnp.allclose(out_p, ref)), "mismatch vs reference (pallas block)"

    # Tiled path with >1 grid step and a masked remainder row tile:
    # n = 4*8*36*32 = 36864 -> rows = 72 at 512 lanes; block_rows=64 -> grid=2.
    y_shape = (4, 8, 36, 32)
    b0 = jax.random.normal(k2, y_shape, dtype=jnp.float32)
    b1 = jax.random.normal(k3, y_shape, dtype=jnp.float32)
    out_t = jax.block_until_ready(
        neg_maximum(b0, b1, block_rows=64, force_pallas=True))
    assert bool(jnp.allclose(out_t, jnp.maximum(b1, -b0))), \
        "mismatch vs reference (tiled path)"

    # Non-128-divisible element count -> prefix Pallas + tail fused XLA.
    z_shape = (3, 5, 7, 11)   # 1155 elements: main = 1152, tail = 3
    c0 = jax.random.normal(k4, z_shape, dtype=jnp.float32)
    c1 = jax.random.normal(k5, z_shape, dtype=jnp.float32)
    out_z = jax.block_until_ready(neg_maximum(c0, c1, force_pallas=True))
    assert bool(jnp.allclose(out_z, jnp.maximum(c1, -c0))), \
        "mismatch vs reference (prefix+tail path)"

    # bf16: dtype-aware sublane alignment (16-row tiles), grid of 2 steps.
    w_shape = (2, 16, 32, 32)  # 32768 elems -> rows = 64 at 512 lanes
    d0 = jax.random.normal(k6, w_shape, dtype=jnp.bfloat16)
    d1 = jax.random.normal(k7, w_shape, dtype=jnp.bfloat16)
    out_w = jax.block_until_ready(
        neg_maximum(d0, d1, block_rows=32, force_pallas=True))
    assert bool(jnp.array_equal(out_w, jnp.maximum(d1, -d0))), \
        "mismatch vs reference (bf16 path)"

    print("KERNEL_OK")
</pallas_src>

<mosaic_0001>
module attributes {stable_mosaic.version = 11 : i64} {
  func.func @_neg_max_kernel(%arg0: i32, %arg1: memref<4x512xf32, #tpu.memory_space<vmem>>, %arg2: memref<4x512xf32, #tpu.memory_space<vmem>>, %arg3: memref<4x512xf32, #tpu.memory_space<vmem>>) attributes {dimension_semantics = [#tpu.dimension_semantics<parallel>], iteration_bounds = array<i64: 1>, scalar_prefetch = 0 : i64, scratch_operands = 0 : i64, tpu.core_type = #tpu.core_type<tc>, window_params = [{transform_indices = @transform_0, window_bounds = array<i64: 4, 512>}, {transform_indices = @transform_1, window_bounds = array<i64: 4, 512>}, {transform_indices = @transform_2, window_bounds = array<i64: 4, 512>}]} {
    %c0 = arith.constant 0 : index
    %c0_0 = arith.constant 0 : index
    %0 = vector.load %arg2[%c0, %c0_0] : memref<4x512xf32, #tpu.memory_space<vmem>>, vector<4x512xf32>
    %c0_1 = arith.constant 0 : index
    %c0_2 = arith.constant 0 : index
    %1 = vector.load %arg1[%c0_1, %c0_2] : memref<4x512xf32, #tpu.memory_space<vmem>>, vector<4x512xf32>
    %cst = arith.constant 0.000000e+00 : f32
    %2 = vector.broadcast %cst : f32 to vector<4x512xf32>
    %3 = arith.subf %2, %1 : vector<4x512xf32>
    %4 = arith.maximumf %0, %3 : vector<4x512xf32>
    %c0_3 = arith.constant 0 : index
    %c0_4 = arith.constant 0 : index
    %5 = vector.load %arg3[%c0_3, %c0_4] : memref<4x512xf32, #tpu.memory_space<vmem>>, vector<4x512xf32>
    tpu.vector_store %arg3[%c0_3, %c0_4], %4 {strides = array<i32>} : memref<4x512xf32, #tpu.memory_space<vmem>>, vector<4x512xf32>,
    return
  }
  func.func @transform_0(%arg0: i32) -> (i32, i32) {
    %c0_i32 = arith.constant 0 : i32
    %c0_i32_0 = arith.constant 0 : i32
    return %arg0, %c0_i32 : i32, i32
  }
  func.func @transform_1(%arg0: i32) -> (i32, i32) {
    %c0_i32 = arith.constant 0 : i32
    %c0_i32_0 = arith.constant 0 : i32
    return %arg0, %c0_i32 : i32, i32
  }
  func.func @transform_2(%arg0: i32) -> (i32, i32) {
    %c0_i32 = arith.constant 0 : i32
    %c0_i32_0 = arith.constant 0 : i32
    return %arg0, %c0_i32 : i32, i32
  }
}

</mosaic_0001>

<bundles_post_ra>
// kernel: tpu_custom_call.1
= control target key start
LH: loop header
LB: loop body
LE: loop exit
PB: predicated region body
PF: predicated region fallthrough
CT: control target
= control target key end

     0   :  { %7 = vsyncpa [#allocation3], 0  ;;  %s191_s0 = inlined_call_operand.hbm [shape: f32[4,512], index: 0, kind: input, shape index: {}]   ;;  %s192_s1 = inlined_call_operand.hbm [shape: f32[4,512], index: 1, kind: input, shape index: {}]   ;;  %s193_s2 = inlined_call_operand.hbm [shape: f32[4,512], index: 2, kind: output, shape index: {}]  }
   0x1   :  { %8 = vsyncpa [#allocation6], 0 }
   0x2   :  { %9 = vsyncpa [#allocation4], 0  ;;  %s137_s9 = smov [#allocation2]   ;;  %s138_s11 = smov [#allocation5]  }
   0x3   :  { %s16_s10 = sshll.u32 %s137_s9, 4  ;;  %s26_s12 = sshll.u32 %s138_s11, 4  ;;  %s17_s10 = int_to_ptr.vmem [resolvable:$true] %s16_s10  ;;  %s27_s12 = int_to_ptr.vmem [resolvable:$true] %s26_s12 }
   0x4   :  { %s65_s15 = scalar_lea.hbm %s191_s0, 256 }
   0x5   :  { %p66_p0 = scmp.ne.s32.totalorder %s191_s0, %s65_s15  ;;  %p69_p1 = scmp.lt.u32.totalorder %s65_s15, %s191_s0 }
   0x7   :  { %p71_p2 = pnand %p69_p1, %p66_p0 }
   0x9   :  { %74 = shalt.err (!%p71_p2)
}
   0xa   :  { %s75_s20 = scalar_lea.vmem %s17_s10, 256  ;;  %p80_p4 = scmp.lt.s32.totalorder %s17_s10, %s17_s10 }
   0xb   :  { %p76_p3 = scmp.ne.s32.totalorder %s17_s10, %s75_s20  ;;  %p81_p5 = scmp.lt.s32.totalorder %s75_s20, %s75_s20 }
   0xd   :  { %p82_p6 = por %p81_p5, %p80_p4 }
   0xf   :  { %p83_p7 = pnand %p82_p6, %p76_p3 }
  0x11   :  { %86 = shalt.err (!%p83_p7)
}
  0x12   :  { %19 = dma.hbm_to_vmem [thread:$0]  %s191_s0, 256, %s17_s10, [#allocation3]  }
  0x13   :  { %s87_s25 = scalar_lea.hbm %s192_s1, 256 }
  0x14   :  { %p88_p8 = scmp.ne.s32.totalorder %s192_s1, %s87_s25  ;;  %p91_p9 = scmp.lt.u32.totalorder %s87_s25, %s192_s1 }
  0x16   :  { %p93_p10 = pnand %p91_p9, %p88_p8 }
  0x18   :  { %96 = shalt.err (!%p93_p10)
}
  0x19   :  { %s97_s30 = scalar_lea.vmem %s27_s12, 256  ;;  %p102_p12 = scmp.lt.s32.totalorder %s27_s12, %s27_s12 }
  0x1a   :  { %p98_p11 = scmp.ne.s32.totalorder %s27_s12, %s97_s30  ;;  %p103_p13 = scmp.lt.s32.totalorder %s97_s30, %s97_s30 }
  0x1c   :  { %p104_p0 = por %p103_p13, %p102_p12 }
  0x1e   :  { %p105_p1 = pnand %p104_p0, %p98_p11 }
  0x20   :  { %108 = shalt.err (!%p105_p1)
}
  0x21   :  { %29 = dma.hbm_to_vmem [thread:$0]  %s192_s1, 256, %s27_s12, [#allocation6]  }
  0x22   :  { %131 = dma.done.wait [#allocation3], 256  }
  0x23   :  { %132 = vsyncadd [#allocation3], 4294967040 }
  0x24   :  { %133 = dma.done.wait [#allocation6], 256  }
  0x25   :  { %134 = vsyncadd [#allocation6], 4294967040  ;;  %v36_v0 = vld [vmem:[#allocation5] sm:$0xff]  ;;  %v38_v1 = vld [vmem:[#allocation2] sm:$0xff]  ;;  %s139_s4 = smov [#allocation7]  }
  0x26   :  { %v40_v2 = vsub.f32 0.0, %v38_v1  ;;  %v37_v3 = vld [vmem:[#allocation5 + $0x8] sm:$0xff]  ;;  %v39_v4 = vld [vmem:[#allocation2 + $0x8] sm:$0xff]  ;;  %s52_s5 = sshll.u32 %s139_s4, 4  ;;  %s53_s5 = int_to_ptr.vmem [resolvable:$true] %s52_s5 }
  0x27   :  { %v41_v5 = vsub.f32 0.0, %v39_v4  ;;  %s109_s6 = scalar_lea.vmem %s53_s5, 256  ;;  %p114_p3 = scmp.lt.s32.totalorder %s53_s5, %s53_s5 }
  0x28   :  { %v42_v6 = vmax.f32 %v36_v0, %v40_v2  ;;  %p110_p2 = scmp.ne.s32.totalorder %s53_s5, %s109_s6  ;;  %p115_p4 = scmp.lt.s32.totalorder %s109_s6, %s109_s6 }
  0x29   :  { %v43_v7 = vmax.f32 %v37_v3, %v41_v5 }
  0x2a   :  { %44 = vst [vmem:[#allocation7] sm:$0xff] %v42_v6  ;;  %p116_p5 = por %p115_p4, %p114_p3 }
  0x2b   :  { %45 = vst [vmem:[#allocation7 + $0x8] sm:$0xff] %v43_v7 }
  0x2c   :  { %p117_p6 = pnand %p116_p5, %p110_p2 }
  0x2e   :  { %120 = shalt.err (!%p117_p6)
}
  0x2f   :  { %s121_s8 = scalar_lea.hbm %s193_s2, 256 }
  0x30   :  { %p122_p7 = scmp.ne.s32.totalorder %s193_s2, %s121_s8  ;;  %p125_p8 = scmp.lt.u32.totalorder %s121_s8, %s193_s2 }
  0x32   :  { %p127_p9 = pnand %p125_p8, %p122_p7 }
  0x34   :  { %130 = shalt.err (!%p127_p9)
}
  0x35   :  { %55 = dma.vmem_to_hbm [thread:$0]  %s53_s5, 256, %s193_s2, [#allocation4]  }
  0x36   :  { %135 = dma.done.wait [#allocation4], 256  }
  0x37   :  { %136 = vsyncadd [#allocation4], 4294967040 }
  0x38   :  { %59 = vsyncpa [#allocation3], 1 }
  0x39   :  { %60 = vsyncpa [#allocation6], 1 }
  0x3a   :  { %61 = vsyncpa [#allocation4], 1 }

</bundles_post_ra>
